<compile_context>
chip_gen: v7x
topology: tpu7x:2x2x1
jax: 0.10.0
libtpu: 0.0.40
codegen_flags: <defaults>
</compile_context>

<pallas_src>
import functools

import jax
import jax.numpy as jnp
from jax.experimental import pallas as pl
from jax.experimental.pallas import tpu as pltpu


def _round_up(x, m):
    return ((x + m - 1) // m) * m


# Loss-neutral pad values: bce(x=128, y=1) = 128 - 128 + log1p(exp(-128)) = 0 exactly
# (exp(-128) underflows to 0 in f32), so w * bce == 0 for every gamma (incl. 0 / frac).
_PAD_X = 128.0
_PAD_Y = 1.0


def _focal_bce_kernel(x_ref, y_ref, o_ref, *, gamma):
    tile_rows, lane = x_ref.shape

    x = x_ref[...].astype(jnp.float32)
    y = y_ref[...].astype(jnp.float32)

    # One exp per element; sigmoid pieces derived via selects + approx reciprocal (EUP).
    e = jnp.exp(-jnp.abs(x))                      # EUP: exp
    s = pl.reciprocal(1.0 + e, approx=True)       # EUP: vrcp (approx)
    one_minus_pt = jnp.where(x >= 0.0, e * s, s)  # = 1 - sigmoid(x)

    # weight = (1 - pt) ** gamma; integer gamma -> square-and-multiply (no exp/log).
    g = float(gamma)
    if g == int(g) and 0 <= int(g) <= 64:
        gi = int(g)
        if gi == 0:
            w = jnp.ones_like(one_minus_pt)
        else:
            w = None
            base = one_minus_pt
            while gi > 0:
                if gi & 1:
                    w = base if w is None else w * base
                gi >>= 1
                if gi:
                    base = base * base
    else:
        w = one_minus_pt ** jnp.float32(g)

    # Numerically stable BCE-with-logits (matches torch):
    #   max(x, 0) - x*y + log1p(exp(-|x|))
    bce = jnp.maximum(x, 0.0) - x * y + jnp.log1p(e)   # EUP: log1p
    contrib = w * bce

    # VPU-only partial reduce to a single (8, 128) slab: sublane-group reduce via a
    # layout-friendly reshape, then lane-group reduce via vreg-aligned 128-wide slices.
    r = contrib.reshape(tile_rows // 8, 8, lane).sum(axis=0)   # (8, lane)
    acc = r[:, 0:128]
    for c in range(1, lane // 128):
        acc = acc + r[:, c * 128:(c + 1) * 128]
    o_ref[...] = acc.reshape(o_ref.shape)


def _partial_sum(x2, y2, tile_rows, gamma):
    """Run the kernel over a (rows, lane) slab with rows % tile_rows == 0; return f32 sum."""
    rows, lane = x2.shape
    num_tiles = rows // tile_rows
    kernel = functools.partial(_focal_bce_kernel, gamma=float(gamma))

    # VMEM budget: 2 inputs x 2 pipeline buffers + small headroom; elementwise
    # temporaries live in vregs so no whole-tile "intermediates" term.
    in_tile_bytes = tile_rows * lane * (x2.dtype.itemsize + y2.dtype.itemsize)
    vmem_limit = min(int(2 * in_tile_bytes + (4 << 20)), 40 << 20)

    n_elems = rows * lane
    cost = pl.CostEstimate(
        flops=16 * n_elems,
        transcendentals=3 * n_elems,
        bytes_accessed=n_elems * (x2.dtype.itemsize + y2.dtype.itemsize)
        + num_tiles * 8 * 128 * 4,
    )

    out = pl.pallas_call(
        kernel,
        out_shape=jax.ShapeDtypeStruct((num_tiles, 8, 128), jnp.float32),
        grid_spec=pltpu.PrefetchScalarGridSpec(
            num_scalar_prefetch=0,
            grid=(num_tiles,),
            in_specs=[
                pl.BlockSpec((tile_rows, lane), lambda i: (i, 0)),
                pl.BlockSpec((tile_rows, lane), lambda i: (i, 0)),
            ],
            out_specs=pl.BlockSpec((1, 8, 128), lambda i: (i, 0, 0)),
        ),
        compiler_params=pltpu.CompilerParams(
            dimension_semantics=("parallel",),
            vmem_limit_bytes=vmem_limit,
        ),
        cost_estimate=cost,
    )(x2, y2)

    # Dense lane-aligned output -> plain full-array sum (no strided gather).
    return jnp.sum(out)


def bce_focal_loss(data, label, gamma=2.0, class_weight=None,
                   *, lane=512, max_tile_rows=2048):
    """Pallas implementation of BCEFocalLoss(reduction='mean').forward."""
    assert data.shape == label.shape
    if class_weight is not None and not isinstance(class_weight, (int, float)):
        # TODO(synk): tensor-valued class_weight (per-class broadcast) not wired in.
        raise NotImplementedError("Only scalar / None class_weight is supported.")

    total = int(data.size)
    x = data.reshape(-1)
    y = label.reshape(-1)

    # Tile-row choice: multiple of 8, capped by max_tile_rows, and aiming for >= 2
    # grid steps (megacore sharding on v7x) whenever there is enough data.
    rows_full = total // lane
    if rows_full >= 16:
        tile_rows = max(8, min(max_tile_rows, ((rows_full // 2) // 8) * 8))
    elif rows_full >= 8:
        tile_rows = 8
    else:
        tile_rows = 0

    loss_sum = jnp.float32(0.0)

    # Aligned bulk: contiguous prefix, row count divisible by tile_rows -> copy-free
    # reshape, no padding, no in-kernel mask.
    tile_elems = tile_rows * lane
    bulk = (total // tile_elems) * tile_elems if tile_rows else 0
    if bulk:
        x2 = x[:bulk].reshape(bulk // lane, lane)
        y2 = y[:bulk].reshape(bulk // lane, lane)
        loss_sum = loss_sum + _partial_sum(x2, y2, tile_rows, gamma)

    # Ragged tail (< tile_rows*lane elements): pad the small remainder with the
    # loss-neutral value and run one small grid step of the same kernel.
    tail = total - bulk
    if tail:
        tail_rows = _round_up(pl.cdiv(tail, lane), 8)
        pad = tail_rows * lane - tail
        xt = jnp.pad(x[bulk:], (0, pad), constant_values=_PAD_X).reshape(tail_rows, lane)
        yt = jnp.pad(y[bulk:], (0, pad), constant_values=_PAD_Y).reshape(tail_rows, lane)
        loss_sum = loss_sum + _partial_sum(xt, yt, tail_rows, gamma)

    # mean + (scalar) class_weight folded into one final f32 scale.
    scale = (1.0 / float(total)) * (1.0 if class_weight is None else float(class_weight))
    return loss_sum * jnp.float32(scale)


def _reference(data, label, gamma=2.0, class_weight=None):
    x = data.astype(jnp.float32)
    y = label.astype(jnp.float32)
    pt = jax.nn.sigmoid(x)
    w = (1.0 - pt) ** gamma
    if class_weight is not None:
        w = w * class_weight
    bce = jnp.maximum(x, 0.0) - x * y + jnp.log1p(jnp.exp(-jnp.abs(x)))
    return jnp.mean(w * bce)


if __name__ == "__main__":
    key = jax.random.PRNGKey(0)
    k1, k2, k3, k4 = jax.random.split(key, 4)

    # Small NCHW shape: batch=2, channels=4, spatial 16x16 (exercises the tail path).
    shape = (2, 4, 16, 16)
    data = jax.random.normal(k1, shape, dtype=jnp.float32)
    label = (jax.random.uniform(k2, shape) > 0.5).astype(jnp.float32)

    loss = jax.block_until_ready(bce_focal_loss(data, label, gamma=2.0))
    ref = _reference(data, label, gamma=2.0)
    # approx reciprocal (EUP vrcp) inside the kernel -> slightly relaxed tolerance
    assert jnp.allclose(loss, ref, rtol=2e-3, atol=1e-6), (loss, ref)

    # Non-aligned shape exercising bulk + tail paths and a scalar class_weight.
    shape2 = (3, 5, 33, 33)
    data2 = jax.random.normal(k3, shape2, dtype=jnp.float32)
    label2 = (jax.random.uniform(k4, shape2) > 0.5).astype(jnp.float32)

    loss2 = jax.block_until_ready(
        bce_focal_loss(data2, label2, gamma=2.0, class_weight=0.75))
    ref2 = _reference(data2, label2, gamma=2.0, class_weight=0.75)
    assert jnp.allclose(loss2, ref2, rtol=2e-3, atol=1e-6), (loss2, ref2)

    print("KERNEL_OK")
</pallas_src>

<mosaic_0001>
module attributes {stable_mosaic.version = 11 : i64} {
  func.func @_focal_bce_kernel(%arg0: i32, %arg1: memref<8x512xf32, #tpu.memory_space<vmem>>, %arg2: memref<8x512xf32, #tpu.memory_space<vmem>>, %arg3: memref<1x8x128xf32, #tpu.memory_space<vmem>>) attributes {dimension_semantics = [#tpu.dimension_semantics<parallel>], iteration_bounds = array<i64: 1>, scalar_prefetch = 0 : i64, scratch_operands = 0 : i64, tpu.core_type = #tpu.core_type<tc>, window_params = [{transform_indices = @transform_0, window_bounds = array<i64: 8, 512>}, {transform_indices = @transform_1, window_bounds = array<i64: 8, 512>}, {transform_indices = @transform_2, window_bounds = array<i64: 1, 8, 128>}]} {
    %c0 = arith.constant 0 : index
    %c0_0 = arith.constant 0 : index
    %0 = vector.load %arg1[%c0, %c0_0] : memref<8x512xf32, #tpu.memory_space<vmem>>, vector<8x512xf32>
    %c0_1 = arith.constant 0 : index
    %c0_2 = arith.constant 0 : index
    %1 = vector.load %arg2[%c0_1, %c0_2] : memref<8x512xf32, #tpu.memory_space<vmem>>, vector<8x512xf32>
    %2 = math.absf %0 : vector<8x512xf32>
    %cst = arith.constant 0.000000e+00 : f32
    %3 = vector.broadcast %cst : f32 to vector<8x512xf32>
    %4 = arith.subf %3, %2 : vector<8x512xf32>
    %5 = math.exp %4 : vector<8x512xf32>
    %cst_3 = arith.constant 1.000000e+00 : f32
    %6 = vector.broadcast %cst_3 : f32 to vector<8x512xf32>
    %7 = arith.addf %6, %5 : vector<8x512xf32>
    %8 = tpu.reciprocal %7 {approx = true} : vector<8x512xf32> -> vector<8x512xf32>
    %cst_4 = arith.constant 0.000000e+00 : f32
    %9 = vector.broadcast %cst_4 : f32 to vector<8x512xf32>
    %10 = arith.cmpf oge, %0, %9 : vector<8x512xf32>
    %11 = arith.mulf %5, %8 : vector<8x512xf32>
    %12 = arith.select %10, %11, %8 : vector<8x512xi1>, vector<8x512xf32>
    %13 = arith.mulf %12, %12 : vector<8x512xf32>
    %cst_5 = arith.constant 0.000000e+00 : f32
    %14 = vector.broadcast %cst_5 : f32 to vector<8x512xf32>
    %15 = arith.maximumf %0, %14 : vector<8x512xf32>
    %16 = arith.mulf %0, %1 : vector<8x512xf32>
    %17 = arith.subf %15, %16 : vector<8x512xf32>
    %18 = math.log1p %5 : vector<8x512xf32>
    %19 = arith.addf %17, %18 : vector<8x512xf32>
    %20 = arith.mulf %13, %19 : vector<8x512xf32>
    %21 = vector.shape_cast %20 : vector<8x512xf32> to vector<1x8x512xf32>
    %cst_6 = arith.constant dense<0.000000e+00> : vector<8x512xf32>
    %22 = vector.multi_reduction <add>, %21, %cst_6 [0] : vector<1x8x512xf32> to vector<8x512xf32>
    %23 = vector.extract_strided_slice %22 {offsets = [0, 0], sizes = [8, 128], strides = [1, 1]} : vector<8x512xf32> to vector<8x128xf32>
    %24 = vector.extract_strided_slice %22 {offsets = [0, 128], sizes = [8, 128], strides = [1, 1]} : vector<8x512xf32> to vector<8x128xf32>
    %25 = arith.addf %23, %24 : vector<8x128xf32>
    %26 = vector.extract_strided_slice %22 {offsets = [0, 256], sizes = [8, 128], strides = [1, 1]} : vector<8x512xf32> to vector<8x128xf32>
    %27 = arith.addf %25, %26 : vector<8x128xf32>
    %28 = vector.extract_strided_slice %22 {offsets = [0, 384], sizes = [8, 128], strides = [1, 1]} : vector<8x512xf32> to vector<8x128xf32>
    %29 = arith.addf %27, %28 : vector<8x128xf32>
    %30 = vector.shape_cast %29 : vector<8x128xf32> to vector<1x8x128xf32>
    %c0_7 = arith.constant 0 : index
    %c0_8 = arith.constant 0 : index
    %c0_9 = arith.constant 0 : index
    %31 = vector.load %arg3[%c0_7, %c0_8, %c0_9] : memref<1x8x128xf32, #tpu.memory_space<vmem>>, vector<1x8x128xf32>
    tpu.vector_store %arg3[%c0_7, %c0_8, %c0_9], %30 {strides = array<i32>} : memref<1x8x128xf32, #tpu.memory_space<vmem>>, vector<1x8x128xf32>,
    return
  }
  func.func @transform_0(%arg0: i32) -> (i32, i32) {
    %c0_i32 = arith.constant 0 : i32
    %c0_i32_0 = arith.constant 0 : i32
    return %arg0, %c0_i32 : i32, i32
  }
  func.func @transform_1(%arg0: i32) -> (i32, i32) {
    %c0_i32 = arith.constant 0 : i32
    %c0_i32_0 = arith.constant 0 : i32
    return %arg0, %c0_i32 : i32, i32
  }
  func.func @transform_2(%arg0: i32) -> (i32, i32, i32) {
    %c0_i32 = arith.constant 0 : i32
    %c0_i32_0 = arith.constant 0 : i32
    %c0_i32_1 = arith.constant 0 : i32
    return %arg0, %c0_i32, %c0_i32_0 : i32, i32, i32
  }
}

</mosaic_0001>

<bundles_post_ra>
// kernel: tpu_custom_call.1
= control target key start
LH: loop header
LB: loop body
LE: loop exit
PB: predicated region body
PF: predicated region fallthrough
CT: control target
= control target key end

     0   :  { %7 = vsyncpa [#allocation3], 0  ;;  %s381_s0 = inlined_call_operand.hbm [shape: f32[8,512], index: 0, kind: input, shape index: {}]   ;;  %s382_s1 = inlined_call_operand.hbm [shape: f32[8,512], index: 1, kind: input, shape index: {}]   ;;  %s383_s2 = inlined_call_operand.hbm [shape: f32[1,8,128], index: 2, kind: output, shape index: {}]  }
   0x1   :  { %8 = vsyncpa [#allocation6], 0 }
   0x2   :  { %9 = vsyncpa [#allocation4], 0  ;;  %s263_s9 = smov [#allocation2]   ;;  %s264_s11 = smov [#allocation5]  }
   0x3   :  { %s16_s10 = sshll.u32 %s263_s9, 4  ;;  %s26_s12 = sshll.u32 %s264_s11, 4  ;;  %s17_s10 = int_to_ptr.vmem [resolvable:$true] %s16_s10  ;;  %s27_s12 = int_to_ptr.vmem [resolvable:$true] %s26_s12 }
   0x4   :  { %s191_s15 = scalar_lea.hbm %s381_s0, 512 }
   0x5   :  { %p192_p0 = scmp.ne.s32.totalorder %s381_s0, %s191_s15  ;;  %p195_p1 = scmp.lt.u32.totalorder %s191_s15, %s381_s0 }
   0x7   :  { %p197_p2 = pnand %p195_p1, %p192_p0 }
   0x9   :  { %200 = shalt.err (!%p197_p2)
}
   0xa   :  { %s201_s20 = scalar_lea.vmem %s17_s10, 512  ;;  %p206_p4 = scmp.lt.s32.totalorder %s17_s10, %s17_s10 }
   0xb   :  { %p202_p3 = scmp.ne.s32.totalorder %s17_s10, %s201_s20  ;;  %p207_p5 = scmp.lt.s32.totalorder %s201_s20, %s201_s20 }
   0xd   :  { %p208_p6 = por %p207_p5, %p206_p4 }
   0xf   :  { %p209_p7 = pnand %p208_p6, %p202_p3 }
  0x11   :  { %212 = shalt.err (!%p209_p7)
}
  0x12   :  { %19 = dma.hbm_to_vmem [thread:$0]  %s381_s0, 512, %s17_s10, [#allocation3]  }
  0x13   :  { %s213_s25 = scalar_lea.hbm %s382_s1, 512 }
  0x14   :  { %p214_p8 = scmp.ne.s32.totalorder %s382_s1, %s213_s25  ;;  %p217_p9 = scmp.lt.u32.totalorder %s213_s25, %s382_s1 }
  0x16   :  { %p219_p10 = pnand %p217_p9, %p214_p8 }
  0x18   :  { %222 = shalt.err (!%p219_p10)
}
  0x19   :  { %s223_s30 = scalar_lea.vmem %s27_s12, 512  ;;  %p228_p12 = scmp.lt.s32.totalorder %s27_s12, %s27_s12 }
  0x1a   :  { %p224_p11 = scmp.ne.s32.totalorder %s27_s12, %s223_s30  ;;  %p229_p13 = scmp.lt.s32.totalorder %s223_s30, %s223_s30 }
  0x1c   :  { %p230_p0 = por %p229_p13, %p228_p12 }
  0x1e   :  { %p231_p1 = pnand %p230_p0, %p224_p11 }
  0x20   :  { %234 = shalt.err (!%p231_p1)
}
  0x21   :  { %29 = dma.hbm_to_vmem [thread:$0]  %s382_s1, 512, %s27_s12, [#allocation6]  }
  0x22   :  { %257 = dma.done.wait [#allocation3], 512  }
  0x23   :  { %258 = vsyncadd [#allocation3], 4294966784 }
  0x24   :  { %259 = dma.done.wait [#allocation6], 512  }
  0x25   :  { %260 = vsyncadd [#allocation6], 4294966784  ;;  %v305_v0 = vld [vmem:[#allocation2] sm:$0xff]  ;;  %v307_v1 = vld [vmem:[#allocation2 + $0x8] sm:$0xff]  ;;  %s265_s1 = smov [#allocation7]  }
  0x26   :  { %v309_v2 = vld [vmem:[#allocation2 + $0x10] sm:$0xff]  ;;  %v311_v3 = vld [vmem:[#allocation2 + $0x18] sm:$0xff]  ;;  %v44_v4 = vand.u32 2147483647, %v305_v0  ;;  %v45_v5 = vand.u32 2147483647, %v307_v1 }
  0x27   :  { %v46_v6 = vand.u32 2147483647, %v309_v2  ;;  %v47_v7 = vand.u32 2147483647, %v311_v3  ;;  %v40_v24 = vld [vmem:[#allocation5] sm:$0xff]  ;;  %v41_v25 = vld [vmem:[#allocation5 + $0x8] sm:$0xff] }
  0x28   :  { %v48_v8 = vsub.f32 0.0, %v44_v4  ;;  %v49_v9 = vsub.f32 0.0, %v45_v5  ;;  %v42_v26 = vld [vmem:[#allocation5 + $0x10] sm:$0xff]  ;;  %vm68_vm0 = vcmp.ge.f32.partialorder %v305_v0, 0.0  ;;  %v43_v27 = vld [vmem:[#allocation5 + $0x18] sm:$0xff]  ;;  %v88_v28 = vmul.f32 %v40_v24, %v305_v0  ;;  %s154_s4 = sshll.u32 %s265_s1, 4  ;;  %s155_s4 = int_to_ptr.vmem [resolvable:$true] %s154_s4 }
  0x29   :  { %v50_v10 = vsub.f32 0.0, %v46_v6  ;;  %v51_v11 = vsub.f32 0.0, %v47_v7  ;;  %v89_v29 = vmul.f32 %v41_v25, %v307_v1  ;;  %v84_v31 = vmax.f32 %v305_v0, 0.0  ;;  %s235_s5 = scalar_lea.vmem %s155_s4, 128  ;;  %p240_p3 = scmp.lt.s32.totalorder %s155_s4, %s155_s4 }
  0x2a   :  { %v52_v12 = vmul.f32 1.442695, %v48_v8  ;;  %v54_v13 = vmul.f32 1.442695, %v49_v9  ;;  %v85_v32 = vmax.f32 %v307_v1, 0.0  ;;  %v86_v34 = vmax.f32 %v309_v2, 0.0  ;;  %p236_p2 = scmp.ne.s32.totalorder %s155_s4, %s235_s5  ;;  %p241_p4 = scmp.lt.s32.totalorder %s235_s5, %s235_s5 }
  0x2b   :  { %v56_v14 = vmul.f32 1.442695, %v50_v10  ;;  %v58_v15 = vmul.f32 1.442695, %v51_v11  ;;  %v90_v35 = vmul.f32 %v42_v26, %v309_v2  ;;  %v87_v37 = vmax.f32 %v311_v3, 0.0 }
  0x2c   :  { %167 = vpow2.f32 %v52_v12  ;;  %v91_v38 = vmul.f32 %v43_v27, %v311_v3  ;;  %vm69_vm1 = vcmp.ge.f32.partialorder %v307_v1, 0.0  ;;  %vm70_vm2 = vcmp.ge.f32.partialorder %v309_v2, 0.0  ;;  %p242_p5 = por %p241_p4, %p240_p3 }
  0x2d   :  { %169 = vpow2.f32 %v54_v13  ;;  %vm71_vm3 = vcmp.ge.f32.partialorder %v311_v3, 0.0  ;;  %v92_v43 = vsub.f32 %v84_v31, %v88_v28  ;;  %v93_v44 = vsub.f32 %v85_v32, %v89_v29 }
  0x2e   :  { %171 = vpow2.f32 %v56_v14  ;;  %v94_v49 = vsub.f32 %v86_v34, %v90_v35  ;;  %v95_v54 = vsub.f32 %v87_v37, %v91_v38  ;;  %p243_p6 = pnand %p242_p5, %p236_p2 }
  0x2f   :  { %173 = vpow2.f32 %v58_v15 }
  0x36   :  { %v168_v16 = vpop.eup %167 }
  0x37   :  { %v170_v17 = vpop.eup %169  ;;  %v60_v18 = vadd.f32 1.0, %v168_v16  ;;  %v99_v30 = vmul.f32 -0.5, %v168_v16  ;;  %v102_v39 = vand.u32 2147483647, %v168_v16 }
  0x38   :  { %v317_v19 = vpop.eup %171  ;;  %v61_v20 = vadd.f32 1.0, %v170_v17  ;;  %v108_v33 = vmul.f32 -0.5, %v170_v17  ;;  %v111_v46 = vand.u32 2147483647, %v170_v17 }
  0x39   :  { %v319_v21 = vpop.eup %173  ;;  %v62_v22 = vadd.f32 1.0, %v317_v19  ;;  %175 = vrcp.f32 %v60_v18  ;;  %v117_v36 = vmul.f32 -0.5, %v317_v19  ;;  %v100_v41 = vadd.f32 1.0, %v99_v30 }
  0x3a   :  { %v63_v23 = vadd.f32 1.0, %v319_v21  ;;  %177 = vrcp.f32 %v61_v20  ;;  %v126_v40 = vmul.f32 -0.5, %v319_v21  ;;  %v109_v45 = vadd.f32 1.0, %v108_v33 }
  0x3b   :  { %179 = vrcp.f32 %v62_v22  ;;  %v118_v50 = vadd.f32 1.0, %v117_v36  ;;  %v120_v51 = vand.u32 2147483647, %v317_v19  ;;  %vm338_vm4 = vcmp.lt.f32.partialorder %v102_v39, 0.0004427343 }
  0x3c   :  { %181 = vrcp.f32 %v63_v23  ;;  %v127_v56 = vadd.f32 1.0, %v126_v40  ;;  %v101_v60 = vmul.f32 %v168_v16, %v100_v41  ;;  %v129_v61 = vand.u32 2147483647, %v319_v21 }
  0x3d   :  { %183 = vlog2.f32 %v60_v18  ;;  %v110_v5 = vmul.f32 %v170_v17, %v109_v45  ;;  %vm349_vm5 = vcmp.lt.f32.partialorder %v111_v46, 0.0004427343  ;;  %v119_v9 = vmul.f32 %v317_v19, %v118_v50 }
  0x3e   :  { %185 = vlog2.f32 %v61_v20  ;;  %vm356_vm6 = vcmp.lt.f32.partialorder %v120_v51, 0.0004427343  ;;  %v128_v14 = vmul.f32 %v319_v21, %v127_v56  ;;  %vm130_vm7 = vcmp.lt.f32.partialorder %v129_v61, 0.0004427343 }
  0x3f   :  { %187 = vlog2.f32 %v62_v22 }
  0x40   :  { %189 = vlog2.f32 %v63_v23 }
  0x43   :  { %v176_v42 = vpop.eup %175 }
  0x44   :  { %v178_v47 = vpop.eup %177  ;;  %v72_v48 = vmul.f32 %v176_v42, %v168_v16 }
  0x45   :  { %v180_v52 = vpop.eup %179  ;;  %v73_v53 = vmul.f32 %v178_v47, %v170_v17 }
  0x46   :  { %v182_v57 = vpop.eup %181  ;;  %v74_v58 = vmul.f32 %v180_v52, %v317_v19  ;;  %v76_v59 = vsel %vm68_vm0, %v72_v48, %v176_v42 }
  0x47   :  { %v184_v62 = vpop.eup %183  ;;  %v75_v63 = vmul.f32 %v182_v57, %v319_v21  ;;  %v77_v4 = vsel %vm69_vm1, %v73_v53, %v178_v47  ;;  %v80_v12 = vmul.f32 %v76_v59, %v76_v59 }
  0x48   :  { %v186_v7 = vpop.eup %185  ;;  %v78_v8 = vsel %vm70_vm2, %v74_v58, %v180_v52  ;;  %v98_v0 = vmul.f32 0.6931472, %v184_v62  ;;  %v81_v16 = vmul.f32 %v77_v4, %v77_v4 }
  0x49   :  { %v188_v11 = vpop.eup %187  ;;  %v79_v1 = vsel %vm71_vm3, %v75_v63, %v182_v57  ;;  %v107_v13 = vmul.f32 0.6931472, %v186_v7  ;;  %v82_v18 = vmul.f32 %v78_v8, %v78_v8 }
  0x4a   :  { %v190_v15 = vpop.eup %189  ;;  %v104_v2 = vsel %vm338_vm4, %v101_v60, %v98_v0  ;;  %v116_v17 = vmul.f32 0.6931472, %v188_v11  ;;  %v83_v23 = vmul.f32 %v79_v1, %v79_v1 }
  0x4b   :  { %v113_v19 = vsel %vm349_vm5, %v110_v5, %v107_v13  ;;  %v125_v20 = vmul.f32 0.6931472, %v190_v15  ;;  %v132_v22 = vadd.f32 %v104_v2, %v92_v43 }
  0x4c   :  { %v122_v3 = vsel %vm356_vm6, %v119_v9, %v116_v17  ;;  %v133_v24 = vadd.f32 %v113_v19, %v93_v44 }
  0x4d   :  { %v131_v25 = vsel %vm130_vm7, %v128_v14, %v125_v20  ;;  %v134_v21 = vadd.f32 %v122_v3, %v94_v49  ;;  %v136_v26 = vmul.f32 %v132_v22, %v80_v12 }
  0x4e   :  { %v135_v27 = vadd.f32 %v131_v25, %v95_v54  ;;  %v137_v28 = vmul.f32 %v133_v24, %v81_v16 }
  0x4f   :  { %v138_v29 = vmul.f32 %v134_v21, %v82_v18 }
  0x50   :  { %v139_v30 = vmul.f32 %v135_v27, %v83_v23  ;;  %v144_v31 = vadd.f32 %v137_v28, %v136_v26 }
  0x52   :  { %v145_v32 = vadd.f32 %v144_v31, %v138_v29 }
  0x54   :  { %v146_v33 = vadd.f32 %v145_v32, %v139_v30 }
  0x56   :  { %147 = vst [vmem:[#allocation7] sm:$0xff] %v146_v33 }
  0x57   :  { %246 = shalt.err (!%p243_p6)
}
  0x58   :  { %s247_s8 = scalar_lea.hbm %s383_s2, 128 }
  0x59   :  { %p248_p7 = scmp.ne.s32.totalorder %s383_s2, %s247_s8  ;;  %p251_p8 = scmp.lt.u32.totalorder %s247_s8, %s383_s2 }
  0x5b   :  { %p253_p9 = pnand %p251_p8, %p248_p7 }
  0x5d   :  { %256 = shalt.err (!%p253_p9)
}
  0x5e   :  { %157 = dma.vmem_to_hbm [thread:$0]  %s155_s4, 128, %s383_s2, [#allocation4]  }
  0x5f   :  { %261 = dma.done.wait [#allocation4], 128  }
  0x60   :  { %262 = vsyncadd [#allocation4], 4294967168 }
  0x61   :  { %161 = vsyncpa [#allocation3], 1 }
  0x62   :  { %162 = vsyncpa [#allocation6], 1 }
  0x63   :  { %163 = vsyncpa [#allocation4], 1 }

</bundles_post_ra>
